<compile_context>
chip_gen: v6e
topology: v6e:2x2x1
jax: 0.10.0
libtpu: 0.0.40
codegen_flags: <defaults>
</compile_context>

<pallas_src>
import functools

import jax
import jax.numpy as jnp
from jax.experimental import pallas as pl
from jax.experimental.pallas import tpu as pltpu

LANE = 128      # lane width: every feature dim is zero-padded to this
SUBLANE = 8     # sublane granularity: node / graph counts padded to this


def _round_up(v, m):
    return ((v + m - 1) // m) * m


def _pad2d(x, rows, cols):
    r, c = x.shape
    return jnp.pad(x, ((0, rows - r), (0, cols - c)))


# ----------------------------------------------------------------------------
# Fused Pallas kernel.
# grid = (num_gcn_layers, num_row_tiles); both axes sequential ("arbitrary"):
#   layer axis carries the H_{l} -> H_{l+1} dependency, the row axis writes
#   disjoint row tiles of the VMEM-resident activation scratch.
# Per grid step (l, i):
#   i == 0            : XW_l = H_l @ W_l  (H_0 = input features), stored in VMEM
#   every step        : H_{l+1}[rows i] = relu(A_hat[rows i] @ XW_l + b_l)
#   last (l, i)       : pooled = P @ H_L ; MLP head ; write logits
# ----------------------------------------------------------------------------
def _fused_gcn_kernel(a_ref, x_ref, gw_ref, gb_ref, pool_ref, lw_ref, lb_ref,
                      out_ref, h_ref, xw_ref, *, num_gcn, num_lin, tm):
    l = pl.program_id(0)
    i = pl.program_id(1)
    n_row_tiles = pl.num_programs(1)

    # ---- layer prologue: compute XW_l once per layer (cheap: N x 128 x 128) --
    @pl.when(i == 0)
    def _():
        @pl.when(l == 0)
        def _():
            h_ref[...] = x_ref[...]          # H_0 = concat([pos, x]) (padded)
        xw_ref[...] = jnp.dot(
            h_ref[...], gw_ref[0],
            preferred_element_type=jnp.float32).astype(jnp.bfloat16)

    # ---- aggregation for this row tile: relu(A_tile @ XW + b) in f32 --------
    agg = jnp.dot(a_ref[...], xw_ref[...], preferred_element_type=jnp.float32)
    h_tile = jnp.maximum(agg + gb_ref[0], 0.0)
    row0 = pl.multiple_of(i * tm, tm)
    h_ref[pl.ds(row0, tm), :] = h_tile.astype(jnp.bfloat16)

    # ---- epilogue: global mean pool + MLP head ------------------------------
    @pl.when((l == num_gcn - 1) & (i == n_row_tiles - 1))
    def _():
        g = jnp.dot(pool_ref[...], h_ref[...],
                    preferred_element_type=jnp.float32)
        # dropout(p=0.2, training=False) -> identity
        for li in range(num_lin):
            g = jnp.dot(g.astype(jnp.bfloat16), lw_ref[li],
                        preferred_element_type=jnp.float32) + lb_ref[li]
            if li < num_lin - 1:
                g = jnp.maximum(g, 0.0)
        out_ref[...] = g


# ----------------------------------------------------------------------------
# Graph-construction glue (built directly at padded size).
# ----------------------------------------------------------------------------
def build_normalized_adjacency(edge_index, num_nodes, padded_size):
    src, dst = edge_index
    a = jnp.zeros((padded_size, padded_size), jnp.float32)
    a = a.at[dst, src].set(1.0)
    a = jnp.maximum(a, a.T)                               # undirected graph
    self_loops = (jnp.arange(padded_size) < num_nodes).astype(jnp.float32)
    a = a + jnp.diag(self_loops)                          # self-loops (real nodes)
    deg = a.sum(axis=1)
    d_inv_sqrt = jnp.where(deg > 0.0,
                           1.0 / jnp.sqrt(jnp.maximum(deg, 1e-12)), 0.0)
    return d_inv_sqrt[:, None] * a * d_inv_sqrt[None, :]


def build_pool_matrix(batch, n_pad, g_pad):
    n = batch.shape[0]
    batch_p = jnp.full((n_pad,), g_pad, batch.dtype).at[:n].set(batch)
    onehot = (batch_p[None, :] == jnp.arange(g_pad)[:, None]).astype(jnp.float32)
    counts = jnp.maximum(onehot.sum(axis=1, keepdims=True), 1.0)
    return onehot / counts


# ----------------------------------------------------------------------------
# Forward wrapper: pad lane-dense, one pipelined pallas_call, slice result.
# ----------------------------------------------------------------------------
def gcn_forward(params, pos, x, edge_index, batch, *, num_graphs, num_classes):
    n = pos.shape[0]

    # Row-tile size for the dominant A_hat @ (XW) aggregation matmul.
    if n <= 256:
        tm = _round_up(n, SUBLANE)
        n_pad = tm
    else:
        tm = 256
        n_pad = _round_up(n, tm)
    g_pad = _round_up(num_graphs, SUBLANE)
    n_row_tiles = n_pad // tm

    # Graph glue built at padded size (no extra O(N^2) pad copy); bf16 operands.
    a_p = build_normalized_adjacency(edge_index, n, n_pad).astype(jnp.bfloat16)
    pool_p = build_pool_matrix(batch, n_pad, g_pad).astype(jnp.bfloat16)

    # out = torch.cat([graph.pos, graph.x], dim=1), padded to 128 lanes.
    x_cat = jnp.concatenate([pos, x], axis=1)
    d = x_cat.shape[1]
    x_p = jnp.zeros((n_pad, LANE), jnp.float32).at[:n, :d].set(x_cat)
    x_p = x_p.astype(jnp.bfloat16)

    num_gcn = len(params["gcn"])
    num_lin = len(params["lin"])

    # Weights: bf16 (MXU operands); biases stay f32 (added in f32).
    gcn_w = jnp.stack([_pad2d(w, LANE, LANE) for w, _ in params["gcn"]]
                      ).astype(jnp.bfloat16)                       # (Lg,128,128)
    gcn_b = jnp.stack([_pad2d(b.reshape(1, -1), 1, LANE)
                       for _, b in params["gcn"]])                 # (Lg,1,128) f32
    lin_w = jnp.stack([_pad2d(w, LANE, LANE) for w, _ in params["lin"]]
                      ).astype(jnp.bfloat16)                       # (Ll,128,128)
    lin_b = jnp.stack([_pad2d(b.reshape(1, -1), 1, LANE)
                       for _, b in params["lin"]])                 # (Ll,1,128) f32

    # Scoped-VMEM budget from the actual buffers (double-buffered inputs +
    # scratch), with headroom; capped well below physical VMEM.
    bf16, f32 = 2, 4
    vmem_bytes = (
        2 * tm * n_pad * bf16                                   # A row tile x2
        + 2 * n_pad * LANE * bf16                               # X
        + 2 * (LANE * LANE * bf16 + LANE * f32)                 # GCN W_l / b_l
        + 2 * g_pad * n_pad * bf16                              # pool matrix
        + 2 * num_lin * (LANE * LANE * bf16 + LANE * f32)       # MLP W / b
        + 2 * g_pad * LANE * f32                                # output
        + 2 * n_pad * LANE * bf16                               # H + XW scratch
    )
    vmem_limit = int(min(max(vmem_bytes * 3 // 2, 8 << 20), 100 << 20))

    kernel = functools.partial(_fused_gcn_kernel, num_gcn=num_gcn,
                               num_lin=num_lin, tm=tm)

    out_padded = pl.pallas_call(
        kernel,
        out_shape=jax.ShapeDtypeStruct((g_pad, LANE), jnp.float32),
        grid_spec=pltpu.PrefetchScalarGridSpec(
            num_scalar_prefetch=0,
            grid=(num_gcn, n_row_tiles),
            in_specs=[
                pl.BlockSpec((tm, n_pad), lambda l, i: (i, 0)),        # A tile
                pl.BlockSpec((n_pad, LANE), lambda l, i: (0, 0)),      # X
                pl.BlockSpec((1, LANE, LANE), lambda l, i: (l, 0, 0)),  # W_l
                pl.BlockSpec((1, 1, LANE), lambda l, i: (l, 0, 0)),     # b_l
                pl.BlockSpec((g_pad, n_pad), lambda l, i: (0, 0)),     # pool
                pl.BlockSpec((num_lin, LANE, LANE), lambda l, i: (0, 0, 0)),
                pl.BlockSpec((num_lin, 1, LANE), lambda l, i: (0, 0, 0)),
            ],
            out_specs=pl.BlockSpec((g_pad, LANE), lambda l, i: (0, 0)),
            scratch_shapes=[
                pltpu.VMEM((n_pad, LANE), jnp.bfloat16),   # H (activations)
                pltpu.VMEM((n_pad, LANE), jnp.bfloat16),   # XW (per layer)
            ]),
        compiler_params=pltpu.CompilerParams(
            dimension_semantics=("arbitrary", "arbitrary"),
            vmem_limit_bytes=vmem_limit),
    )(a_p, x_p, gcn_w, gcn_b, pool_p, lin_w, lin_b)

    # Strip graph-row and class-column padding (plain JAX glue).
    return out_padded[:num_graphs, :num_classes]


# ----------------------------------------------------------------------------
# Parameter init (matches torch defaults closely enough for a demo)
# ----------------------------------------------------------------------------
def glorot_uniform(key, shape):
    fan_in, fan_out = shape
    limit = (6.0 / (fan_in + fan_out)) ** 0.5
    return jax.random.uniform(key, shape, jnp.float32, -limit, limit)


def linear_init(key, shape):
    fan_in = shape[0]
    bound = 1.0 / (fan_in ** 0.5)
    kw, kb = jax.random.split(key)
    w = jax.random.uniform(kw, shape, jnp.float32, -bound, bound)
    b = jax.random.uniform(kb, (shape[1],), jnp.float32, -bound, bound)
    return w, b


def init_params(key, num_node_features, gcn_hidden, linear_intermediate,
                num_classes):
    gcn_sizes = [num_node_features] + list(gcn_hidden)
    lin_sizes = [gcn_sizes[-1]] + list(linear_intermediate) + [num_classes]
    params = {"gcn": [], "lin": []}
    keys = jax.random.split(key, len(gcn_sizes) - 1 + len(lin_sizes) - 1)
    idx = 0
    for fi, fo in zip(gcn_sizes[:-1], gcn_sizes[1:]):
        w = glorot_uniform(keys[idx], (fi, fo))
        b = jnp.zeros((fo,), jnp.float32)
        params["gcn"].append((w, b))
        idx += 1
    for fi, fo in zip(lin_sizes[:-1], lin_sizes[1:]):
        params["lin"].append(linear_init(keys[idx], (fi, fo)))
        idx += 1
    return params


# ----------------------------------------------------------------------------
if __name__ == "__main__":
    key = jax.random.PRNGKey(0)
    k_pos, k_x, k_edge, k_params = jax.random.split(key, 4)

    # Synthetic graph batch: 2 graphs, 32 nodes each.
    num_nodes = 64
    num_graphs = 2
    pos_dim, feat_dim = 3, 5                       # concat -> num_node_features = 8
    num_node_features = pos_dim + feat_dim
    gcn_hidden = [32, 32]
    linear_intermediate = [16]
    num_classes = 4

    pos = jax.random.normal(k_pos, (num_nodes, pos_dim), jnp.float32)
    x = jax.random.normal(k_x, (num_nodes, feat_dim), jnp.float32)

    # Random edges, kept within each graph.
    num_edges = 128
    ks, kd = jax.random.split(k_edge)
    half = num_nodes // 2
    src = jax.random.randint(ks, (num_edges,), 0, half)
    dst = jax.random.randint(kd, (num_edges,), 0, half)
    graph_of_edge = (jnp.arange(num_edges) % num_graphs) * half
    edge_index = jnp.stack([src + graph_of_edge, dst + graph_of_edge])

    batch = jnp.repeat(jnp.arange(num_graphs), half)

    params = init_params(k_params, num_node_features, gcn_hidden,
                         linear_intermediate, num_classes)

    fwd = jax.jit(functools.partial(gcn_forward, num_graphs=num_graphs,
                                    num_classes=num_classes))
    logits = fwd(params, pos, x, edge_index, batch)
    jax.block_until_ready(logits)
    assert logits.shape == (num_graphs, num_classes)
    assert bool(jnp.all(jnp.isfinite(logits)))
    print("KERNEL_OK")
</pallas_src>

<mosaic_0001>
module attributes {stable_mosaic.version = 11 : i64} {
  func.func @_fused_gcn_kernel(%arg0: i32, %arg1: i32, %arg2: memref<64x64xbf16, #tpu.memory_space<vmem>>, %arg3: memref<64x128xbf16, #tpu.memory_space<vmem>>, %arg4: memref<1x128x128xbf16, #tpu.memory_space<vmem>>, %arg5: memref<1x1x128xf32, #tpu.memory_space<vmem>>, %arg6: memref<8x64xbf16, #tpu.memory_space<vmem>>, %arg7: memref<2x128x128xbf16, #tpu.memory_space<vmem>>, %arg8: memref<2x1x128xf32, #tpu.memory_space<vmem>>, %arg9: memref<8x128xf32, #tpu.memory_space<vmem>>, %arg10: memref<64x128xbf16, #tpu.memory_space<vmem>>, %arg11: memref<64x128xbf16, #tpu.memory_space<vmem>>) attributes {dimension_semantics = [#tpu.dimension_semantics<arbitrary>, #tpu.dimension_semantics<arbitrary>], iteration_bounds = array<i64: 2, 1>, scalar_prefetch = 0 : i64, scratch_operands = 2 : i64, tpu.core_type = #tpu.core_type<tc>, window_params = [{transform_indices = @transform_0, window_bounds = array<i64: 64, 64>}, {pipeline_mode = #tpu.pipeline_mode<synchronous>, transform_indices = @transform_1, window_bounds = array<i64: 64, 128>}, {transform_indices = @transform_2, window_bounds = array<i64: 1, 128, 128>}, {transform_indices = @transform_3, window_bounds = array<i64: 1, 1, 128>}, {pipeline_mode = #tpu.pipeline_mode<synchronous>, transform_indices = @transform_4, window_bounds = array<i64: 8, 64>}, {pipeline_mode = #tpu.pipeline_mode<synchronous>, transform_indices = @transform_5, window_bounds = array<i64: 2, 128, 128>}, {pipeline_mode = #tpu.pipeline_mode<synchronous>, transform_indices = @transform_6, window_bounds = array<i64: 2, 1, 128>}, {pipeline_mode = #tpu.pipeline_mode<synchronous>, transform_indices = @transform_7, window_bounds = array<i64: 8, 128>}]} {
    %c0_i32 = arith.constant 0 : i32
    %0 = arith.cmpi eq, %arg1, %c0_i32 : i32
    %1 = arith.extui %0 : i1 to i32
    %c0_i32_0 = arith.constant 0 : i32
    %2 = arith.cmpi ne, %1, %c0_i32_0 : i32
    scf.if %2 {
      %c0_i32_11 = arith.constant 0 : i32
      %22 = arith.cmpi eq, %arg0, %c0_i32_11 : i32
      %23 = arith.extui %22 : i1 to i32
      %c0_i32_12 = arith.constant 0 : i32
      %24 = arith.cmpi ne, %23, %c0_i32_12 : i32
      scf.if %24 {
        %c0_21 = arith.constant 0 : index
        %c0_22 = arith.constant 0 : index
        %31 = vector.load %arg3[%c0_21, %c0_22] : memref<64x128xbf16, #tpu.memory_space<vmem>>, vector<64x128xbf16>
        %c0_23 = arith.constant 0 : index
        %c0_24 = arith.constant 0 : index
        %32 = vector.load %arg10[%c0_23, %c0_24] : memref<64x128xbf16, #tpu.memory_space<vmem>>, vector<64x128xbf16>
        tpu.vector_store %arg10[%c0_23, %c0_24], %31 {strides = array<i32>} : memref<64x128xbf16, #tpu.memory_space<vmem>>, vector<64x128xbf16>,
      } else {
      }
      %c0_13 = arith.constant 0 : index
      %c0_14 = arith.constant 0 : index
      %25 = vector.load %arg10[%c0_13, %c0_14] : memref<64x128xbf16, #tpu.memory_space<vmem>>, vector<64x128xbf16>
      %c0_15 = arith.constant 0 : index
      %c0_16 = arith.constant 0 : index
      %c0_17 = arith.constant 0 : index
      %26 = vector.load %arg4[%c0_15, %c0_16, %c0_17] : memref<1x128x128xbf16, #tpu.memory_space<vmem>>, vector<1x128x128xbf16>
      %27 = vector.shape_cast %26 : vector<1x128x128xbf16> to vector<128x128xbf16>
      %cst_18 = arith.constant dense<0.000000e+00> : vector<64x128xf32>
      %28 = tpu.matmul %25, %27, %cst_18 {dimension_numbers = #tpu.dot_dimension_numbers<[1], [0], [0], [1], [0, 0, 1, 1], [], []>} : vector<64x128xbf16>, vector<128x128xbf16>, vector<64x128xf32> -> vector<64x128xf32>
      %29 = arith.truncf %28 : vector<64x128xf32> to vector<64x128xbf16>
      %c0_19 = arith.constant 0 : index
      %c0_20 = arith.constant 0 : index
      %30 = vector.load %arg11[%c0_19, %c0_20] : memref<64x128xbf16, #tpu.memory_space<vmem>>, vector<64x128xbf16>
      tpu.vector_store %arg11[%c0_19, %c0_20], %29 {strides = array<i32>} : memref<64x128xbf16, #tpu.memory_space<vmem>>, vector<64x128xbf16>,
    } else {
    }
    %c0 = arith.constant 0 : index
    %c0_1 = arith.constant 0 : index
    %3 = vector.load %arg2[%c0, %c0_1] : memref<64x64xbf16, #tpu.memory_space<vmem>>, vector<64x64xbf16>
    %c0_2 = arith.constant 0 : index
    %c0_3 = arith.constant 0 : index
    %4 = vector.load %arg11[%c0_2, %c0_3] : memref<64x128xbf16, #tpu.memory_space<vmem>>, vector<64x128xbf16>
    %cst = arith.constant dense<0.000000e+00> : vector<64x128xf32>
    %5 = tpu.matmul %3, %4, %cst {dimension_numbers = #tpu.dot_dimension_numbers<[1], [0], [0], [1], [0, 0, 1, 1], [], []>} : vector<64x64xbf16>, vector<64x128xbf16>, vector<64x128xf32> -> vector<64x128xf32>
    %c0_4 = arith.constant 0 : index
    %c0_5 = arith.constant 0 : index
    %c0_6 = arith.constant 0 : index
    %6 = vector.load %arg5[%c0_4, %c0_5, %c0_6] : memref<1x1x128xf32, #tpu.memory_space<vmem>>, vector<1x1x128xf32>
    %7 = vector.shape_cast %6 : vector<1x1x128xf32> to vector<1x128xf32>
    %8 = vector.broadcast %7 : vector<1x128xf32> to vector<64x128xf32>
    %9 = arith.addf %5, %8 : vector<64x128xf32>
    %cst_7 = arith.constant 0.000000e+00 : f32
    %10 = vector.broadcast %cst_7 : f32 to vector<64x128xf32>
    %11 = arith.maximumf %9, %10 : vector<64x128xf32>
    %c64_i32 = arith.constant 64 : i32
    %12 = arith.muli %arg1, %c64_i32 : i32
    %13 = tpu.assume_multiple %12, 64 : i32
    %14 = arith.truncf %11 : vector<64x128xf32> to vector<64x128xbf16>
    %15 = arith.index_cast %13 : i32 to index
    %c0_8 = arith.constant 0 : index
    %16 = vector.load %arg10[%15, %c0_8] : memref<64x128xbf16, #tpu.memory_space<vmem>>, vector<64x128xbf16>
    tpu.vector_store %arg10[%15, %c0_8], %14 {strides = array<i32>} : memref<64x128xbf16, #tpu.memory_space<vmem>>, vector<64x128xbf16>,
    %c1_i32 = arith.constant 1 : i32
    %17 = arith.cmpi eq, %arg0, %c1_i32 : i32
    %c0_i32_9 = arith.constant 0 : i32
    %18 = arith.cmpi eq, %arg1, %c0_i32_9 : i32
    %19 = arith.andi %17, %18 : i1
    %20 = arith.extui %19 : i1 to i32
    %c0_i32_10 = arith.constant 0 : i32
    %21 = arith.cmpi ne, %20, %c0_i32_10 : i32
    scf.if %21 {
      %c0_11 = arith.constant 0 : index
      %c0_12 = arith.constant 0 : index
      %22 = vector.load %arg6[%c0_11, %c0_12] : memref<8x64xbf16, #tpu.memory_space<vmem>>, vector<8x64xbf16>
      %c0_13 = arith.constant 0 : index
      %c0_14 = arith.constant 0 : index
      %23 = vector.load %arg10[%c0_13, %c0_14] : memref<64x128xbf16, #tpu.memory_space<vmem>>, vector<64x128xbf16>
      %cst_15 = arith.constant dense<0.000000e+00> : vector<8x128xf32>
      %24 = tpu.matmul %22, %23, %cst_15 {dimension_numbers = #tpu.dot_dimension_numbers<[1], [0], [0], [1], [0, 0, 1, 1], [], []>} : vector<8x64xbf16>, vector<64x128xbf16>, vector<8x128xf32> -> vector<8x128xf32>
      %25 = arith.truncf %24 : vector<8x128xf32> to vector<8x128xbf16>
      %c0_16 = arith.constant 0 : index
      %c0_17 = arith.constant 0 : index
      %c0_18 = arith.constant 0 : index
      %26 = vector.load %arg7[%c0_16, %c0_17, %c0_18] : memref<2x128x128xbf16, #tpu.memory_space<vmem>>, vector<1x128x128xbf16>
      %27 = vector.shape_cast %26 : vector<1x128x128xbf16> to vector<128x128xbf16>
      %cst_19 = arith.constant dense<0.000000e+00> : vector<8x128xf32>
      %28 = tpu.matmul %25, %27, %cst_19 {dimension_numbers = #tpu.dot_dimension_numbers<[1], [0], [0], [1], [0, 0, 1, 1], [], []>} : vector<8x128xbf16>, vector<128x128xbf16>, vector<8x128xf32> -> vector<8x128xf32>
      %c0_20 = arith.constant 0 : index
      %c0_21 = arith.constant 0 : index
      %c0_22 = arith.constant 0 : index
      %29 = vector.load %arg8[%c0_20, %c0_21, %c0_22] : memref<2x1x128xf32, #tpu.memory_space<vmem>>, vector<1x1x128xf32>
      %30 = vector.shape_cast %29 : vector<1x1x128xf32> to vector<1x128xf32>
      %31 = vector.broadcast %30 : vector<1x128xf32> to vector<8x128xf32>
      %32 = arith.addf %28, %31 : vector<8x128xf32>
      %cst_23 = arith.constant 0.000000e+00 : f32
      %33 = vector.broadcast %cst_23 : f32 to vector<8x128xf32>
      %34 = arith.maximumf %32, %33 : vector<8x128xf32>
      %35 = arith.truncf %34 : vector<8x128xf32> to vector<8x128xbf16>
      %c1 = arith.constant 1 : index
      %c0_24 = arith.constant 0 : index
      %c0_25 = arith.constant 0 : index
      %36 = vector.load %arg7[%c1, %c0_24, %c0_25] : memref<2x128x128xbf16, #tpu.memory_space<vmem>>, vector<1x128x128xbf16>
      %37 = vector.shape_cast %36 : vector<1x128x128xbf16> to vector<128x128xbf16>
      %cst_26 = arith.constant dense<0.000000e+00> : vector<8x128xf32>
      %38 = tpu.matmul %35, %37, %cst_26 {dimension_numbers = #tpu.dot_dimension_numbers<[1], [0], [0], [1], [0, 0, 1, 1], [], []>} : vector<8x128xbf16>, vector<128x128xbf16>, vector<8x128xf32> -> vector<8x128xf32>
      %c1_27 = arith.constant 1 : index
      %c0_28 = arith.constant 0 : index
      %c0_29 = arith.constant 0 : index
      %39 = vector.load %arg8[%c1_27, %c0_28, %c0_29] : memref<2x1x128xf32, #tpu.memory_space<vmem>>, vector<1x1x128xf32>
      %40 = vector.shape_cast %39 : vector<1x1x128xf32> to vector<1x128xf32>
      %41 = vector.broadcast %40 : vector<1x128xf32> to vector<8x128xf32>
      %42 = arith.addf %38, %41 : vector<8x128xf32>
      %c0_30 = arith.constant 0 : index
      %c0_31 = arith.constant 0 : index
      %43 = vector.load %arg9[%c0_30, %c0_31] : memref<8x128xf32, #tpu.memory_space<vmem>>, vector<8x128xf32>
      tpu.vector_store %arg9[%c0_30, %c0_31], %42 {strides = array<i32>} : memref<8x128xf32, #tpu.memory_space<vmem>>, vector<8x128xf32>,
    } else {
    }
    return
  }
  func.func @transform_0(%arg0: i32, %arg1: i32) -> (i32, i32) {
    %c0_i32 = arith.constant 0 : i32
    %c0_i32_0 = arith.constant 0 : i32
    return %arg1, %c0_i32 : i32, i32
  }
  func.func @transform_1(%arg0: i32, %arg1: i32) -> (i32, i32) {
    %c0_i32 = arith.constant 0 : i32
    %c0_i32_0 = arith.constant 0 : i32
    %c0_i32_1 = arith.constant 0 : i32
    return %c0_i32, %c0_i32_0 : i32, i32
  }
  func.func @transform_2(%arg0: i32, %arg1: i32) -> (i32, i32, i32) {
    %c0_i32 = arith.constant 0 : i32
    %c0_i32_0 = arith.constant 0 : i32
    %c0_i32_1 = arith.constant 0 : i32
    return %arg0, %c0_i32, %c0_i32_0 : i32, i32, i32
  }
  func.func @transform_3(%arg0: i32, %arg1: i32) -> (i32, i32, i32) {
    %c0_i32 = arith.constant 0 : i32
    %c0_i32_0 = arith.constant 0 : i32
    %c0_i32_1 = arith.constant 0 : i32
    return %arg0, %c0_i32, %c0_i32_0 : i32, i32, i32
  }
  func.func @transform_4(%arg0: i32, %arg1: i32) -> (i32, i32) {
    %c0_i32 = arith.constant 0 : i32
    %c0_i32_0 = arith.constant 0 : i32
    %c0_i32_1 = arith.constant 0 : i32
    return %c0_i32, %c0_i32_0 : i32, i32
  }
  func.func @transform_5(%arg0: i32, %arg1: i32) -> (i32, i32, i32) {
    %c0_i32 = arith.constant 0 : i32
    %c0_i32_0 = arith.constant 0 : i32
    %c0_i32_1 = arith.constant 0 : i32
    %c0_i32_2 = arith.constant 0 : i32
    return %c0_i32, %c0_i32_0, %c0_i32_1 : i32, i32, i32
  }
  func.func @transform_6(%arg0: i32, %arg1: i32) -> (i32, i32, i32) {
    %c0_i32 = arith.constant 0 : i32
    %c0_i32_0 = arith.constant 0 : i32
    %c0_i32_1 = arith.constant 0 : i32
    %c0_i32_2 = arith.constant 0 : i32
    return %c0_i32, %c0_i32_0, %c0_i32_1 : i32, i32, i32
  }
  func.func @transform_7(%arg0: i32, %arg1: i32) -> (i32, i32) {
    %c0_i32 = arith.constant 0 : i32
    %c0_i32_0 = arith.constant 0 : i32
    %c0_i32_1 = arith.constant 0 : i32
    return %c0_i32, %c0_i32_0 : i32, i32
  }
}

</mosaic_0001>

<bundles_post_ra>
// kernel: gcn_forward.1
= control target key start
LH: loop header
LB: loop body
LE: loop exit
PB: predicated region body
PF: predicated region fallthrough
CT: control target
= control target key end

     0   :  { %s1531_s24 = smov 0   ;;  %s1533_s25 = smov 0   ;;  %s1706_s0 = inlined_call_operand.vmem [shape: bf16[64,64], index: 0, kind: input, shape index: {}]   ;;  %s1707_s1 = inlined_call_operand.vmem [shape: bf16[64,128], index: 1, kind: input, shape index: {}]   ;;  %s1708_s2 = inlined_call_operand.vmem [shape: bf16[2,128,128], index: 2, kind: input, shape index: {}]   ;;  %s1709_s3 = inlined_call_operand.vmem [shape: f32[2,1,128], index: 3, kind: input, shape index: {}]   ;;  %s1710_s4 = inlined_call_operand.vmem [shape: bf16[8,64], index: 4, kind: input, shape index: {}]   ;;  %s1711_s5 = inlined_call_operand.vmem [shape: bf16[2,128,128], index: 5, kind: input, shape index: {}]   ;;  %s1712_s6 = inlined_call_operand.vmem [shape: f32[2,1,128], index: 6, kind: input, shape index: {}]   ;;  %s1713_s7 = inlined_call_operand.vmem [shape: f32[8,128], index: 7, kind: output, shape index: {}]  }
   0x1   :  { %s1535_s26 = smov 0  }
   0x2 LB: > { %s29_s27 = sadd.s32 1, %s1483_s25  ;;  %p1112_p0 = scmp.ge.s32.totalorder %s1487_s26, 1  ;;  %s1487_s26 = sphi %s1535_s26, %s17_s26   ;;  %s1483_s25 = sphi %s1533_s25, %s1715_s25   ;;  %s1479_s24 = sphi %s1531_s24, %s1714_s24  }
   0x3   : > { %p31_p1 = scmp.ge.s32.totalorder %s29_s27, 2  ;;  %p263_p2 = scmp.lt.s32.totalorder %s1487_s26, 3 }
   0x5   : > { %s1717_s27 = smov (%p31_p1, %s29_s27), 0  ;;  %p264_p3 = pnand %p1112_p0, %p263_p2 }
   0x6   : > { %p304_p4 = scmp.lt.s32.totalorder (!%p264_p3), %s1479_s24, 1  ;;  %p1115_p5 = scmp.ne.s32.totalorder (!%p264_p3), %s1479_s24, 0 }
   0x7   : > { %267 = sbr.rel (%p264_p3) target bundleno = 1112 (0x458), region = 48 }
   0xc   : > { %s1553_s28 = scalar_select %p304_p4, %s1479_s24, 1 }
   0xd   : > { %320 = sbr.rel (%p1115_p5) target bundleno = 21 (0x15), region = 56 }
   0xe   : > { %s1200_s29 = sshll.u32 %s1553_s28, 6  ;;  %s311_s9 = scalar_lea.vmem %s1709_s3, %s1553_s28 }
   0xf   : > { %s1563_s12 = scalar_lea.vmem %s1708_s2, %s1200_s29 }
  0x12   : > { %v321_v0 = vld [vmem:[%s1707_s1] sm:$0xff]   ;;  %v323_v1 = vld [vmem:[%s1707_s1 + $0x8] sm:$0xff]   ;;  %v325_v2 = vld [vmem:[%s1707_s1 + $0x10] sm:$0xff]  }
  0x13   : > { %329 = vst [vmem:[#allocation2] sm:$0xff] %v321_v0   ;;  %331 = vst [vmem:[#allocation2 + $0x8] sm:$0xff] %v323_v1   ;;  %v327_v3 = vld [vmem:[%s1707_s1 + $0x18] sm:$0xff]  }
  0x14   : > { %333 = vst [vmem:[#allocation2 + $0x10] sm:$0xff] %v325_v2   ;;  %335 = vst [vmem:[#allocation2 + $0x18] sm:$0xff] %v327_v3  }
  0x15 PF: > { %v1425_v4 = vld [vmem:[%s1563_s12 + $0x38] sm:$0xff]   ;;  %v1426_v5 = vld [vmem:[%s1563_s12 + $0x30] sm:$0xff]   ;;  %v1427_v6 = vld [vmem:[%s1563_s12 + $0x28] sm:$0xff]   ;;  %vm605_vm0 = vcmask 523264   ;;  %p736_p6 = scmp.eq.s32.totalorder %s1479_s24, 1 }
  0x16   : > { %1307 = vmatprep.subr.bf16.mxu0 %v1425_v4  ;;  %v1428_v7 = vld [vmem:[%s1563_s12 + $0x20] sm:$0xff]   ;;  %v1429_v9 = vld [vmem:[%s1563_s12 + $0x18] sm:$0xff]   ;;  %v1430_v10 = vld [vmem:[%s1563_s12 + $0x10] sm:$0xff]   ;;  %v1489_v2 = vmov (%p736_p6), 0.0   ;;  %vm1490_vm1 = vmmov (%p736_p6), 0  }
  0x17   : > { %1308 = vmatpush3.bf16.msra.mxu0 %v1425_v4  ;;  %v1431_v11 = vld [vmem:[%s1563_s12 + $0x8] sm:$0xff]   ;;  %v1432_v12 = vld [vmem:[%s1563_s12] sm:$0xff]   ;;  %v1443_v34 = vld [vmem:[%s1706_s0 + $0x10] sm:$0xff]  }
  0x18   : > { %1309 = vmatprep.subr.bf16.mxu0 %v1426_v5  ;;  %v1441_v16 = vld [vmem:[%s1706_s0] sm:$0xff]   ;;  %v1442_v33 = vld [vmem:[%s1706_s0 + $0x8] sm:$0xff]   ;;  %v1444_v35 = vld [vmem:[%s1706_s0 + $0x18] sm:$0xff]  }
  0x19   : > { %1339 = vmatprep.mubr.msk.bf16.mxu1 %vm605_vm0, %v1441_v16  ;;  %v1136_v37 = vld [vmem:[%s311_s9] ss:$0 sm:$0xff]  ;;  %v1449_v4 = vld [vmem:[%s1711_s5 + $0x38] sm:$0xff] (%p736_p6)   ;;  %v1458_v16 = vld [vmem:[%s1711_s5 + $0x70] sm:$0xff] (%p736_p6)  }
  0x1a   : > { %v1433_v8 = vld [vmem:[#allocation2] sm:$0xff]   ;;  %v1434_v13 = vld [vmem:[#allocation2 + $0x8] sm:$0xff]  }
  0x1b   : > { %1310 = vmatpush3.bf16.msra.mxu0 %v1426_v5  ;;  %1323 = vmatprep.mubr.bf16.mxu0 %v1433_v8  ;;  %v1435_v14 = vld [vmem:[#allocation2 + $0x10] sm:$0xff]   ;;  %v1436_v15 = vld [vmem:[#allocation2 + $0x18] sm:$0xff]   ;;  %v1451_v8 = vld [vmem:[%s1711_s5 + $0x28] sm:$0xff] (%p736_p6)  }
  0x1c   : > { %1311 = vmatprep.subr.bf16.mxu0 %v1427_v6 }
  0x1f   : > { %1312 = vmatpush3.bf16.msra.mxu0 %v1427_v6  ;;  %v1450_v6 = vld [vmem:[%s1711_s5 + $0x30] sm:$0xff] (%p736_p6)  }
  0x20   : > { %1313 = vmatprep.subr.bf16.mxu0 %v1428_v7 }
  0x23   : > { %1314 = vmatpush3.bf16.msra.mxu0 %v1428_v7 }
  0x24   : > { %1315 = vmatprep.subr.bf16.mxu0 %v1429_v9 }
  0x27   : > { %1316 = vmatpush3.bf16.msra.mxu0 %v1429_v9  ;;  %v741_v9 = vld [vmem:[%s1710_s4] sm:$0xf] (%p736_p6) }
  0x28   : > { %1317 = vmatprep.subr.bf16.mxu0 %v1430_v10 }
  0x2b   : > { %1318 = vmatpush3.bf16.msra.mxu0 %v1430_v10  ;;  %v1452_v10 = vld [vmem:[%s1711_s5 + $0x20] sm:$0xff] (%p736_p6)  }
  0x2c   : > { %1319 = vmatprep.subr.bf16.mxu0 %v1431_v11 }
  0x2f   : > { %1320 = vmatpush3.bf16.msra.mxu0 %v1431_v11  ;;  %v1453_v11 = vld [vmem:[%s1711_s5 + $0x18] sm:$0xff] (%p736_p6)  }
  0x30   : > { %1321 = vmatprep.subr.bf16.mxu0 %v1432_v12 }
  0x33   : > { %1322 = vmatpush3.bf16.msra.mxu0 %v1432_v12  ;;  %v1454_v12 = vld [vmem:[%s1711_s5 + $0x10] sm:$0xff] (%p736_p6)  }
  0x34   : > { %1347 = vmatprep.subr.bf16.mxu0 (%p736_p6), %v1489_v2 }
  0x36   : > { %1324 = vmatmul.mubr.bf16.vlgmr.msra.gmra.mxu0 %v1434_v13  ;;  %v1455_v13 = vld [vmem:[%s1711_s5 + $0x8] sm:$0xff] (%p736_p6)  }
  0x37   : > { %1327 = vmatprep.mubr.bf16.mxu0 %v1435_v14  ;;  %v1456_v14 = vld [vmem:[%s1711_s5] sm:$0xff] (%p736_p6)  }
  0x3e   : > { %1328 = vmatmul.mubr.bf16.gmra.mxu0 %v1436_v15  ;;  %v1457_v15 = vld [vmem:[%s1711_s5 + $0x78] sm:$0xff] (%p736_p6)  }
  0x3f   : > { %1355 = vmatprep.mubr.msk.bf16.mxu0 (%p736_p6), %vm1490_vm1, %v1489_v2 }
  0xf6   : > { %v1325_v17 = vpop.f32.mrf.mxu0 }
  0xf8   : > { %v467_v18 = vpop.f32.mrf.mxu0 }
  0xfa   : > { %v1326_v19 = vpop.f32.mrf.mxu0 }
  0xfb   : > { %v1226_v20 = vpack.c.bf16 %v1326_v19, %v1325_v17  ;;  %v1459_v17 = vld [vmem:[%s1711_s5 + $0x68] sm:$0xff] (%p736_p6)   ;;  %v1461_v19 = vld [vmem:[%s1711_s5 + $0x58] sm:$0xff] (%p736_p6)  }
  0xfc   : > { %v470_v21 = vpop.f32.mrf.mxu0 }
  0xfd   : > { %1258 = vst [vmem:[#allocation3 + $0x8] sm:$0xff] %v1226_v20   ;;  %v1221_v22 = vpack.c.bf16 %v470_v21, %v467_v18  ;;  %v1460_v18 = vld [vmem:[%s1711_s5 + $0x60] sm:$0xff] (%p736_p6)   ;;  %v1462_v20 = vld [vmem:[%s1711_s5 + $0x50] sm:$0xff] (%p736_p6)  }
  0xfe   : > { %v1329_v23 = vpop.f32.mrf.mxu0 }
  0xff   : > { %1222 = vst [vmem:[#allocation3] sm:$0xff] %v1221_v22  }
 0x100   : > { %v483_v24 = vpop.f32.mrf.mxu0 }
 0x102   : > { %v1330_v25 = vpop.f32.mrf.mxu0 }
 0x103   : > { %v1236_v26 = vpack.c.bf16 %v1330_v25, %v1329_v23 }
 0x104   : > { %v486_v27 = vpop.f32.mrf.mxu0  ;;  %v1439_v31 = vld [vmem:[#allocation3 + $0x8] sm:$0xff]  }
 0x105   : > { %1260 = vst [vmem:[#allocation3 + $0x18] sm:$0xff] %v1236_v26   ;;  %v1231_v28 = vpack.c.bf16 %v486_v27, %v483_v24  ;;  %v1463_v26 = vld [vmem:[%s1711_s5 + $0x48] sm:$0xff] (%p736_p6)   ;;  %v1464_v27 = vld [vmem:[%s1711_s5 + $0x40] sm:$0xff] (%p736_p6)  }
 0x106   : > { %v1440_v32 = vld [vmem:[#allocation3] sm:$0xff]  }
 0x107   : > { %1259 = vst [vmem:[#allocation3 + $0x10] sm:$0xff] %v1231_v28   ;;  %v1163_v28 = vld [vmem:[%s1712_s6] ss:$0 sm:$0xff] (%p736_p6) }
 0x10c   : > { %v1437_v29 = vld [vmem:[#allocation3 + $0x18] sm:$0xff]  }
 0x10d   : > { %1331 = vmatprep.subr.bf16.mxu1 %v1437_v29 }
 0x10e   : > { %v1438_v30 = vld [vmem:[#allocation3 + $0x10] sm:$0xff]   ;;  %1332 = vmatpush3.bf16.msra.mxu1 %v1437_v29 }
 0x10f   : > { %1333 = vmatprep.subr.bf16.mxu1 %v1438_v30 }
 0x112   : > { %1334 = vmatpush3.bf16.msra.mxu1 %v1438_v30 }
 0x113   : > { %1335 = vmatprep.subr.bf16.mxu1 %v1439_v31 }
 0x116   : > { %1336 = vmatpush3.bf16.msra.mxu1 %v1439_v31 }
 0x117   : > { %1337 = vmatprep.subr.bf16.mxu1 %v1440_v32 }
 0x11a   : > { %1338 = vmatpush3.bf16.msra.mxu1 %v1440_v32 }
 0x11b   : > { %1359 = vmatprep.subr.bf16.mxu1 (%p736_p6), %v1489_v2 }
 0x11d   : > { %1340 = vmatmul.mubr.msk.bf16.vlgmr.msra.gmra.mxu1 %vm605_vm0, %v1442_v33 }
 0x11e   : > { %1343 = vmatprep.mubr.msk.bf16.mxu1 %vm605_vm0, %v1443_v34  ;;  %1360 = vmatpush3.bf16.msra.mxu1 (%p736_p6), %v1449_v4 }
 0x11f   : > { %1361 = vmatprep.subr.bf16.mxu1 (%p736_p6), %v1489_v2 }
 0x122   : > { %1362 = vmatpush3.bf16.msra.mxu1 (%p736_p6), %v1450_v6 }
 0x123   : > { %1363 = vmatprep.subr.bf16.mxu1 (%p736_p6), %v1489_v2 }
 0x125   : > { %1344 = vmatmul.mubr.msk.bf16.gmra.mxu1 %vm605_vm0, %v1444_v35 }
 0x126   : > { %1375 = vmatprep.mubr.msk.bf16.mxu1 (%p736_p6), %vm1490_vm1, %v1489_v2  ;;  %1364 = vmatpush3.bf16.msra.mxu1 (%p736_p6), %v1451_v8 }
 0x127   : > { %1365 = vmatprep.subr.bf16.mxu1 (%p736_p6), %v1489_v2 }
 0x12a   : > { %1366 = vmatpush3.bf16.msra.mxu1 (%p736_p6), %v1452_v10 }
 0x12b   : > { %1367 = vmatprep.subr.bf16.mxu1 (%p736_p6), %v1489_v2 }
 0x12e   : > { %1368 = vmatpush3.bf16.msra.mxu1 (%p736_p6), %v1453_v11 }
 0x12f   : > { %1369 = vmatprep.subr.bf16.mxu1 (%p736_p6), %v1489_v2 }
 0x132   : > { %1370 = vmatpush3.bf16.msra.mxu1 (%p736_p6), %v1454_v12 }
 0x133   : > { %1371 = vmatprep.subr.bf16.mxu1 (%p736_p6), %v1489_v2 }
 0x136   : > { %1372 = vmatpush3.bf16.msra.mxu1 (%p736_p6), %v1455_v13 }
 0x137   : > { %1373 = vmatprep.subr.bf16.mxu1 (%p736_p6), %v1489_v2 }
 0x13a   : > { %1374 = vmatpush3.bf16.msra.mxu1 (%p736_p6), %v1456_v14 }
 0x1dd   : > { %v1341_v36 = vpop.f32.mrf.mxu1 }
 0x1de   : > { %v661_v39 = vadd.f32 %v1341_v36, %v1136_v37  ;;  %v1189_v36 = vld [vmem:[%s1712_s6 + $0x1] ss:$0 sm:$0xff] (%p736_p6) }
 0x1df   : > { %v652_v38 = vpop.f32.mrf.mxu1 }
 0x1e0   : > { %v653_v41 = vadd.f32 %v1136_v37, %v652_v38  ;;  %v685_v44 = vmax.f32 %v661_v39, 0.0 }
 0x1e1   : > { %v1342_v40 = vpop.f32.mrf.mxu1 }
 0x1e2   : > { %v664_v42 = vadd.f32 %v1342_v40, %v1136_v37  ;;  %v683_v48 = vmax.f32 %v653_v41, 0.0 }
 0x1e3   : > { %v655_v43 = vpop.f32.mrf.mxu1 }
 0x1e4   : > { %v686_v45 = vmax.f32 %v664_v42, 0.0  ;;  %v656_v46 = vadd.f32 %v1136_v37, %v655_v43 }
 0x1e5   : > { %v1345_v47 = vpop.f32.mrf.mxu1 }
 0x1e6   : > { %v1246_v49 = vpack.c.bf16 %v686_v45, %v685_v44  ;;  %v684_v50 = vmax.f32 %v656_v46, 0.0  ;;  %v677_v53 = vadd.f32 %v1345_v47, %v1136_v37 }
 0x1e7   : > { %v668_v51 = vpop.f32.mrf.mxu1 }
 0x1e8   : > { %1261 = vst [vmem:[#allocation2 + $0x8] sm:$0xff] %v1246_v49   ;;  %v1241_v52 = vpack.c.bf16 %v684_v50, %v683_v48  ;;  %v669_v55 = vadd.f32 %v1136_v37, %v668_v51  ;;  %v689_v58 = vmax.f32 %v677_v53, 0.0 }
 0x1e9   : > { %v1346_v54 = vpop.f32.mrf.mxu1 }
 0x1ea   : > { %1242 = vst [vmem:[#allocation2] sm:$0xff] %v1241_v52   ;;  %v680_v56 = vadd.f32 %v1346_v54, %v1136_v37  ;;  %v687_v61 = vmax.f32 %v669_v55, 0.0 }
 0x1eb   : > { %v671_v57 = vpop.f32.mrf.mxu1 }
 0x1ec   : > { %v690_v59 = vmax.f32 %v680_v56, 0.0  ;;  %v672_v60 = vadd.f32 %v1136_v37, %v671_v57 }
 0x1ee   : > { %v1256_v62 = vpack.c.bf16 %v690_v59, %v689_v58  ;;  %v688_v63 = vmax.f32 %v672_v60, 0.0  ;;  %740 = sbr.rel (!%p736_p6) target bundleno = 1112 (0x458), region = 60 }
 0x1ef   : > { %v1447_v5 = vld [vmem:[#allocation2 + $0x8] sm:$0xff] (%p736_p6)  }
 0x1f0   : > { %1263 = vst [vmem:[#allocation2 + $0x18] sm:$0xff] %v1256_v62   ;;  %v1251_v0 = vpack.c.bf16 %v688_v63, %v687_v61 }
 0x1f1   : > { %v1448_v7 = vld [vmem:[#allocation2] sm:$0xff] (%p736_p6)  }
 0x1f2   : > { %1262 = vst [vmem:[#allocation2 + $0x10] sm:$0xff] %v1251_v0  }
 0x1f7   : > { %v1445_v1 = vld [vmem:[#allocation2 + $0x18] sm:$0xff]  }
 0x1f8   : > { %1348 = vmatpush3.bf16.msra.mxu0 %v1445_v1 }
 0x1f9   : > { %v1446_v3 = vld [vmem:[#allocation2 + $0x10] sm:$0xff]   ;;  %1349 = vmatprep.subr.bf16.mxu0 %v1489_v2 }
 0x1fc   : > { %1350 = vmatpush3.bf16.msra.mxu0 %v1446_v3 }
 0x1fd   : > { %1351 = vmatprep.subr.bf16.mxu0 %v1489_v2 }
 0x200   : > { %1352 = vmatpush3.bf16.msra.mxu0 %v1447_v5 }
 0x201   : > { %1353 = vmatprep.subr.bf16.mxu0 %v1489_v2 }
 0x204   : > { %1354 = vmatpush3.bf16.msra.mxu0 %v1448_v7 }
 0x205   : > { %1379 = vmatprep.subr.bf16.mxu0 %v1489_v2 }
 0x207   : > { %1356 = vmatmul.mubr.msk.bf16.vlgmr.msra.gmra.mxu0 %vm605_vm0, %v741_v9 }
 0x208   : > { %1395 = vmatprep.mubr.msk.bf16.mxu0 %vm1490_vm1, %v1489_v2  ;;  %1380 = vmatpush3.bf16.msra.mxu0 %v1457_v15 }
 0x209   : > { %1381 = vmatprep.subr.bf16.mxu0 %v1489_v2 }
 0x20c   : > { %1382 = vmatpush3.bf16.msra.mxu0 %v1458_v16 }
 0x20d   : > { %1383 = vmatprep.subr.bf16.mxu0 %v1489_v2 }
 0x210   : > { %1384 = vmatpush3.bf16.msra.mxu0 %v1459_v17 }
 0x211   : > { %1385 = vmatprep.subr.bf16.mxu0 %v1489_v2 }
 0x214   : > { %1386 = vmatpush3.bf16.msra.mxu0 %v1460_v18 }
 0x215   : > { %1387 = vmatprep.subr.bf16.mxu0 %v1489_v2 }
 0x218   : > { %1388 = vmatpush3.bf16.msra.mxu0 %v1461_v19 }
 0x219   : > { %1389 = vmatprep.subr.bf16.mxu0 %v1489_v2 }
 0x21c   : > { %1390 = vmatpush3.bf16.msra.mxu0 %v1462_v20 }
 0x21d   : > { %1391 = vmatprep.subr.bf16.mxu0 %v1489_v2 }
 0x220   : > { %1392 = vmatpush3.bf16.msra.mxu0 %v1463_v26 }
 0x221   : > { %1393 = vmatprep.subr.bf16.mxu0 %v1489_v2 }
 0x224   : > { %1394 = vmatpush3.bf16.msra.mxu0 %v1464_v27 }
 0x2c7   : > { %v811_v21 = vpop.f32.mrf.mxu0 }
 0x2c8   : > { %v817_v22 = vpack.c.bf16 %v811_v21, %v811_v21 }
 0x2c9   : > { %v1357_v23 = vpop.f32.mrf.mxu0 }
 0x2ca   : > { %1376 = vmatmul.mubr.bf16.vlgmr.msra.gmra.mxu1 %v817_v22 }
 0x2cb   : > { %v814_v24 = vpop.f32.mrf.mxu0 }
 0x2cd   : > { %v1358_v25 = vpop.f32.mrf.mxu0 }
 0x38a   : > { %v923_v29 = vpop.f32.mrf.mxu1 }
 0x38b   : > { %v924_v30 = vadd.f32 %v1163_v28, %v923_v29 }
 0x38c   : > { %v1377_v31 = vpop.f32.mrf.mxu1 }
 0x38d   : > { %v929_v32 = vmax.f32 %v924_v30, 0.0 }
 0x38e   : > { %v926_v33 = vpop.f32.mrf.mxu1 }
 0x38f   : > { %v930_v34 = vpack.c.bf16 %v929_v32, %v929_v32 }
 0x390   : > { %v1378_v35 = vpop.f32.mrf.mxu1 }
 0x391   : > { %1396 = vmatmul.mubr.bf16.vlgmr.msra.gmra.mxu0 %v930_v34 }
 0x451   : > { %v1038_v37 = vpop.f32.mrf.mxu0 }
 0x452   : > { %v1039_v38 = vadd.f32 %v1189_v36, %v1038_v37 }
 0x453   : > { %v1397_v39 = vpop.f32.mrf.mxu0 }
 0x454   : > { %1044 = vst [vmem:[%s1713_s7] sm:$0xff] %v1039_v38 }
 0x455   : > { %v1041_v40 = vpop.f32.mrf.mxu0 }
 0x457   : > { %v1398_v41 = vpop.f32.mrf.mxu0 }
 0x458 PF: > { %s17_s26 = sadd.s32 1, %s1487_s26   ;;  %s1714_s24 = smov %s1483_s25 }
 0x459   : > { %p14_p7 = scmp.ge.s32.totalorder %s17_s26, 4   ;;  %s1715_s25 = smov %s1717_s27 }
 0x45b   :  { %16 = sbr.rel (!%p14_p7) target bundleno = 2 (0x2), region = 95 }

</bundles_post_ra>
